<compile_context>
chip_gen: v7x
topology: tpu7x:2x2x1
jax: 0.10.0
libtpu: 0.0.40
codegen_flags: <defaults>
</compile_context>

<pallas_src>
import functools

import jax
import jax.numpy as jnp
from jax.experimental import pallas as pl
from jax.experimental.pallas import tpu as pltpu


# ----------------------------------------------------------------------------
# Kernel: one (batch, H-tile) per grid step.
# ----------------------------------------------------------------------------
def _inception_kernel(*refs, tile_h, out_w, has_halo):
    if has_halo:
        x_ref, xh_ref, w_ref, b_ref, o_ref, xw_ref = refs
    else:
        x_ref, w_ref, b_ref, o_ref = refs

    th, W = tile_h, out_w
    C = x_ref.shape[-1]
    K = 3 * C
    Cout = o_ref.shape[-1]

    if has_halo:
        # Assemble the (th+4)-row padded window in persistent VMEM scratch with
        # two slice stores (no per-step axis-0 concat copy).
        xw_ref[0:th] = x_ref[0]                    # main rows  [h*th, h*th+th)
        xw_ref[th:th + 4] = xh_ref[0]              # 4 halo rows below
        # Fold the 3 horizontal taps into the lane axis (3 strided W-slices).
        p3 = jnp.concatenate([xw_ref[:, kw:kw + W, :] for kw in range(3)],
                             axis=-1)                              # (th+4, W, 3C) bf16
    else:
        xw = x_ref[0]                                              # (th+4, W+2, C) bf16
        p3 = jnp.concatenate([xw[:, kw:kw + W, :] for kw in range(3)],
                             axis=-1)                              # (th+4, W, 3C) bf16

    # One accumulating MXU matmul per vertical tap: bf16 x bf16 -> f32 accumulate.
    # Weight rows are packed (kh, kw, c)-major, so slab kh is rows [kh*3C, (kh+1)*3C).
    dims = (((1,), (0,)), ((), ()))
    acc = jax.lax.dot_general(p3[0:th].reshape(th * W, K), w_ref[0:K, :], dims,
                              preferred_element_type=jnp.float32)
    for kh in range(1, 5):
        acc = acc + jax.lax.dot_general(
            p3[kh:kh + th].reshape(th * W, K),
            w_ref[kh * K:(kh + 1) * K, :],
            dims, preferred_element_type=jnp.float32)              # (th*W, Cout) f32

    out = acc + b_ref[...]                                         # +(1, Cout)
    o_ref[0] = out.reshape(th, W, Cout).astype(o_ref.dtype)


# ----------------------------------------------------------------------------
# Generation-aware VMEM limit + tile-height chooser.
# ----------------------------------------------------------------------------
def _vmem_limit_bytes():
    cap = 128 * 1024 * 1024
    try:
        cap = int(getattr(pltpu.get_tpu_info(), "vmem_capacity_bytes", cap))
    except Exception:
        pass
    # ~40-45% of physical VMEM: 48 MiB on v5e/v6e (128 MiB), ~27 MiB on v7x (64 MiB/TC).
    return int(min(48 * 1024 * 1024, 0.42 * cap))


def _pick_tile_h(H, W, C, Cout, vmem_limit):
    wp = W + 2

    def est(th):
        halo = th < H
        rows = th if halo else th + 4
        x_main = 2 * rows * wp * C * 2                 # main input block (x2 buffers)
        x_halo = 2 * 4 * wp * C * 2 if halo else 0     # halo block (x2 buffers)
        xw_scr = (th + 4) * wp * C * 2 if halo else 0  # window scratch
        w_dbl = 2 * 15 * C * Cout * 2                  # weight (x2 buffers, bf16)
        bias = 2 * 128 * 4
        out = 2 * th * W * Cout * 4                    # f32 output (x2 buffers)
        p3 = (th + 4) * W * 3 * C * 2                  # folded-window temporary
        patch = th * W * 3 * C * 2                     # per-tap matmul operand
        accs = 2 * th * W * Cout * 4                   # live f32 accumulators
        return x_main + x_halo + xw_scr + w_dbl + bias + out + p3 + patch + accs

    budget = int(0.80 * vmem_limit)
    if est(H) <= budget:
        return H
    cands = [t for t in range(8, H, 8) if H % t == 0 and est(t) <= budget]
    if cands:
        return max(cands)
    # TODO(synk): also tile W (2-column halo) when a single 8-row block still busts VMEM.
    return 8 if H % 8 == 0 else H


# ----------------------------------------------------------------------------
# Wrapper: NCHW in -> NCHW out (matches the PyTorch module interface).
# ----------------------------------------------------------------------------
@functools.partial(jax.jit, static_argnames=("tile_h",))
def inception_block_forward(x_nchw, w_comb, b_comb, tile_h=None):
    """x: (N, C, H, W) f32 -> (N, 2*(C//2), H, W) f32 == cat([conv_a(x), conv_b(x)], 1)."""
    N, C, H, W = x_nchw.shape
    Cout = w_comb.shape[1]
    Wp = W + 2

    vmem_limit = _vmem_limit_bytes()
    th = _pick_tile_h(H, W, C, Cout, vmem_limit) if tile_h is None else int(tile_h)
    if th != H:
        assert H % th == 0 and th % 4 == 0, "tile_h must divide H and be a multiple of 4"
    n_h = H // th
    has_halo = th < H

    # NCHW -> NHWC, zero halo pad for the (5,3)/(2,1) window, bf16 cast: ONE fused
    # XLA copy pass.  TODO(synk): drop entirely if the model is NHWC bf16 end-to-end.
    x = jnp.pad(jnp.transpose(x_nchw, (0, 2, 3, 1)).astype(jnp.bfloat16),
                ((0, 0), (2, 2), (1, 1), (0, 0)))                 # (N, H+4, W+2, C)

    kernel = functools.partial(_inception_kernel, tile_h=th, out_w=W, has_halo=has_halo)

    if has_halo:
        in_specs = [
            pl.BlockSpec((1, th, Wp, C), lambda n, h: (n, h, 0, 0)),
            # 4-row halo just below the main block (requires th % 4 == 0).
            pl.BlockSpec((1, 4, Wp, C), lambda n, h: (n, (h + 1) * (th // 4), 0, 0)),
        ]
        operands = (x, x)
        scratch_shapes = [pltpu.VMEM((th + 4, Wp, C), jnp.bfloat16)]
    else:
        in_specs = [pl.BlockSpec((1, th + 4, Wp, C), lambda n, h: (n, 0, 0, 0))]
        operands = (x,)
        scratch_shapes = []
    in_specs += [
        pl.BlockSpec((15 * C, Cout), lambda n, h: (0, 0)),
        pl.BlockSpec((1, Cout), lambda n, h: (0, 0)),
    ]

    cost = pl.CostEstimate(
        flops=2 * N * H * W * 15 * C * Cout,
        transcendentals=0,
        bytes_accessed=(N * (H + 4) * Wp * C * 2 + 15 * C * Cout * 2
                        + N * H * W * Cout * 4),
    )

    out_nhwc = pl.pallas_call(
        kernel,
        out_shape=jax.ShapeDtypeStruct((N, H, W, Cout), jnp.float32),
        grid_spec=pltpu.PrefetchScalarGridSpec(
            num_scalar_prefetch=0,
            grid=(N, n_h),
            in_specs=in_specs,
            out_specs=pl.BlockSpec((1, th, W, Cout), lambda n, h: (n, h, 0, 0)),
            scratch_shapes=scratch_shapes,
        ),
        compiler_params=pltpu.CompilerParams(
            dimension_semantics=("parallel", "parallel"),
            vmem_limit_bytes=vmem_limit),
        cost_estimate=cost,
    )(*operands, w_comb, b_comb)

    # TODO(synk): return out_nhwc directly (optionally bf16) if the consumer is NHWC;
    # this transpose exists only to match the PyTorch NCHW interface.
    return jnp.transpose(out_nhwc, (0, 3, 1, 2))


# ----------------------------------------------------------------------------
# Parameter init (PyTorch Conv2d layout) + packing into the fused im2col weight.
# ----------------------------------------------------------------------------
def pack_params(wa, ba, wb, bb):
    """(Cout,Cin,KH,KW) conv weights -> (15*C, 2*Ch) bf16 weight + (1, 2*Ch) f32 bias."""
    Ch, C, KH, KW = wa.shape                                  # (C/2, C, 5, 3)
    wa_k = jnp.transpose(wa, (2, 3, 1, 0)).reshape(KH * KW * C, Ch)
    wb_full = jnp.zeros((KH, KW, C, Ch), jnp.float32)
    # conv_b (3x1, pad (1,0)) taps live at (kh, kw) = (1..3, 1) of the 5x3 window.
    wb_full = wb_full.at[1:4, 1].set(jnp.transpose(wb[:, :, :, 0], (2, 1, 0)))
    wb_k = wb_full.reshape(KH * KW * C, Ch)
    w_comb = jnp.concatenate([wa_k, wb_k], axis=1).astype(jnp.bfloat16)   # (15C, 2Ch)
    b_comb = jnp.concatenate([ba, bb])[None, :].astype(jnp.float32)       # (1, 2Ch)
    return w_comb, b_comb


def init_params(key, in_channels):
    C = in_channels
    Ch = C // 2
    k1, k2, k3, k4 = jax.random.split(key, 4)
    wa = 0.05 * jax.random.normal(k1, (Ch, C, 5, 3), jnp.float32)
    wb = 0.05 * jax.random.normal(k2, (Ch, C, 3, 1), jnp.float32)
    ba = 0.05 * jax.random.normal(k3, (Ch,), jnp.float32)
    bb = 0.05 * jax.random.normal(k4, (Ch,), jnp.float32)
    return (wa, ba, wb, bb), pack_params(wa, ba, wb, bb)


# ----------------------------------------------------------------------------
# Pure-JAX reference (lax.conv, NCHW).  Operands rounded to bf16 to match the
# kernel's MXU input precision; accumulation is f32 in both.
# ----------------------------------------------------------------------------
def reference_forward(x_nchw, wa, ba, wb, bb):
    r = lambda v: v.astype(jnp.bfloat16).astype(jnp.float32)  # noqa: E731

    def conv(x, w, b, pad):
        y = jax.lax.conv_general_dilated(
            r(x), r(w), window_strides=(1, 1), padding=pad,
            dimension_numbers=("NCHW", "OIHW", "NCHW"),
            precision=jax.lax.Precision.HIGHEST)
        return y + b[None, :, None, None]

    a = conv(x_nchw, wa, ba, ((2, 2), (1, 1)))
    b = conv(x_nchw, wb, bb, ((1, 1), (0, 0)))
    return jnp.concatenate([a, b], axis=1)


# ----------------------------------------------------------------------------
if __name__ == "__main__":
    in_channels = 4
    root = jax.random.PRNGKey(0)
    kparam, kx1, kx2 = jax.random.split(root, 3)
    raw, (w_comb, b_comb) = init_params(kparam, in_channels)

    features = [
        jax.random.normal(kx1, (2, in_channels, 16, 16), jnp.float32),
        jax.random.normal(kx2, (2, in_channels, 32, 16), jnp.float32),
    ]

    outs = [inception_block_forward(f, w_comb, b_comb) for f in features]
    # Also exercise the spatially-tiled (halo + scratch-window) path explicitly.
    out_tiled = inception_block_forward(features[1], w_comb, b_comb, tile_h=8)
    jax.block_until_ready((outs, out_tiled))

    for f, o in zip(features, outs):
        ref = reference_forward(f, *raw)
        assert o.shape == ref.shape
        assert jnp.allclose(o, ref, atol=1e-4, rtol=1e-3), \
            float(jnp.max(jnp.abs(o - ref)))
    ref1 = reference_forward(features[1], *raw)
    assert jnp.allclose(out_tiled, ref1, atol=1e-4, rtol=1e-3), \
        float(jnp.max(jnp.abs(out_tiled - ref1)))

    print("KERNEL_OK")
</pallas_src>

<mosaic_0001>
module attributes {stable_mosaic.version = 11 : i64} {
  func.func @_inception_kernel(%arg0: i32, %arg1: i32, %arg2: memref<1x20x18x4xbf16, #tpu.memory_space<vmem>>, %arg3: memref<60x4xbf16, #tpu.memory_space<vmem>>, %arg4: memref<1x4xf32, #tpu.memory_space<vmem>>, %arg5: memref<1x16x16x4xf32, #tpu.memory_space<vmem>>) attributes {dimension_semantics = [#tpu.dimension_semantics<parallel>, #tpu.dimension_semantics<parallel>], iteration_bounds = array<i64: 2, 1>, scalar_prefetch = 0 : i64, scratch_operands = 0 : i64, tpu.core_type = #tpu.core_type<tc>, window_params = [{transform_indices = @transform_0, window_bounds = array<i64: 1, 20, 18, 4>}, {pipeline_mode = #tpu.pipeline_mode<synchronous>, transform_indices = @transform_1, window_bounds = array<i64: 60, 4>}, {pipeline_mode = #tpu.pipeline_mode<synchronous>, transform_indices = @transform_2, window_bounds = array<i64: 1, 4>}, {transform_indices = @transform_3, window_bounds = array<i64: 1, 16, 16, 4>}]} {
    %c0 = arith.constant 0 : index
    %c0_0 = arith.constant 0 : index
    %c0_1 = arith.constant 0 : index
    %c0_2 = arith.constant 0 : index
    %0 = vector.load %arg2[%c0, %c0_0, %c0_1, %c0_2] : memref<1x20x18x4xbf16, #tpu.memory_space<vmem>>, vector<1x20x18x4xbf16>
    %1 = vector.shape_cast %0 : vector<1x20x18x4xbf16> to vector<20x18x4xbf16>
    %2 = vector.extract_strided_slice %1 {offsets = [0, 0, 0], sizes = [20, 16, 4], strides = [1, 1, 1]} : vector<20x18x4xbf16> to vector<20x16x4xbf16>
    %3 = vector.extract_strided_slice %1 {offsets = [0, 1, 0], sizes = [20, 16, 4], strides = [1, 1, 1]} : vector<20x18x4xbf16> to vector<20x16x4xbf16>
    %4 = vector.extract_strided_slice %1 {offsets = [0, 2, 0], sizes = [20, 16, 4], strides = [1, 1, 1]} : vector<20x18x4xbf16> to vector<20x16x4xbf16>
    %5 = tpu.concatenate %2, %3, %4 in 2 : vector<20x16x4xbf16>, vector<20x16x4xbf16>, vector<20x16x4xbf16> -> vector<20x16x12xbf16>
    %6 = vector.extract_strided_slice %5 {offsets = [0, 0, 0], sizes = [16, 16, 12], strides = [1, 1, 1]} : vector<20x16x12xbf16> to vector<16x16x12xbf16>
    %7 = vector.shape_cast %6 : vector<16x16x12xbf16> to vector<256x12xbf16>
    %c0_3 = arith.constant 0 : index
    %c0_4 = arith.constant 0 : index
    %8 = vector.load %arg3[%c0_3, %c0_4] : memref<60x4xbf16, #tpu.memory_space<vmem>>, vector<12x4xbf16>
    %cst = arith.constant dense<0.000000e+00> : vector<256x4xf32>
    %9 = tpu.matmul %7, %8, %cst {dimension_numbers = #tpu.dot_dimension_numbers<[1], [0], [0], [1], [0, 0, 1, 1], [], []>} : vector<256x12xbf16>, vector<12x4xbf16>, vector<256x4xf32> -> vector<256x4xf32>
    %10 = vector.extract_strided_slice %5 {offsets = [1, 0, 0], sizes = [16, 16, 12], strides = [1, 1, 1]} : vector<20x16x12xbf16> to vector<16x16x12xbf16>
    %11 = vector.shape_cast %10 : vector<16x16x12xbf16> to vector<256x12xbf16>
    %c12 = arith.constant 12 : index
    %c0_5 = arith.constant 0 : index
    %12 = vector.load %arg3[%c12, %c0_5] : memref<60x4xbf16, #tpu.memory_space<vmem>>, vector<12x4xbf16>
    %cst_6 = arith.constant dense<0.000000e+00> : vector<256x4xf32>
    %13 = tpu.matmul %11, %12, %cst_6 {dimension_numbers = #tpu.dot_dimension_numbers<[1], [0], [0], [1], [0, 0, 1, 1], [], []>} : vector<256x12xbf16>, vector<12x4xbf16>, vector<256x4xf32> -> vector<256x4xf32>
    %14 = arith.addf %9, %13 : vector<256x4xf32>
    %15 = vector.extract_strided_slice %5 {offsets = [2, 0, 0], sizes = [16, 16, 12], strides = [1, 1, 1]} : vector<20x16x12xbf16> to vector<16x16x12xbf16>
    %16 = vector.shape_cast %15 : vector<16x16x12xbf16> to vector<256x12xbf16>
    %c24 = arith.constant 24 : index
    %c0_7 = arith.constant 0 : index
    %17 = vector.load %arg3[%c24, %c0_7] : memref<60x4xbf16, #tpu.memory_space<vmem>>, vector<12x4xbf16>
    %cst_8 = arith.constant dense<0.000000e+00> : vector<256x4xf32>
    %18 = tpu.matmul %16, %17, %cst_8 {dimension_numbers = #tpu.dot_dimension_numbers<[1], [0], [0], [1], [0, 0, 1, 1], [], []>} : vector<256x12xbf16>, vector<12x4xbf16>, vector<256x4xf32> -> vector<256x4xf32>
    %19 = arith.addf %14, %18 : vector<256x4xf32>
    %20 = vector.extract_strided_slice %5 {offsets = [3, 0, 0], sizes = [16, 16, 12], strides = [1, 1, 1]} : vector<20x16x12xbf16> to vector<16x16x12xbf16>
    %21 = vector.shape_cast %20 : vector<16x16x12xbf16> to vector<256x12xbf16>
    %c36 = arith.constant 36 : index
    %c0_9 = arith.constant 0 : index
    %22 = vector.load %arg3[%c36, %c0_9] : memref<60x4xbf16, #tpu.memory_space<vmem>>, vector<12x4xbf16>
    %cst_10 = arith.constant dense<0.000000e+00> : vector<256x4xf32>
    %23 = tpu.matmul %21, %22, %cst_10 {dimension_numbers = #tpu.dot_dimension_numbers<[1], [0], [0], [1], [0, 0, 1, 1], [], []>} : vector<256x12xbf16>, vector<12x4xbf16>, vector<256x4xf32> -> vector<256x4xf32>
    %24 = arith.addf %19, %23 : vector<256x4xf32>
    %25 = vector.extract_strided_slice %5 {offsets = [4, 0, 0], sizes = [16, 16, 12], strides = [1, 1, 1]} : vector<20x16x12xbf16> to vector<16x16x12xbf16>
    %26 = vector.shape_cast %25 : vector<16x16x12xbf16> to vector<256x12xbf16>
    %c48 = arith.constant 48 : index
    %c0_11 = arith.constant 0 : index
    %27 = vector.load %arg3[%c48, %c0_11] : memref<60x4xbf16, #tpu.memory_space<vmem>>, vector<12x4xbf16>
    %cst_12 = arith.constant dense<0.000000e+00> : vector<256x4xf32>
    %28 = tpu.matmul %26, %27, %cst_12 {dimension_numbers = #tpu.dot_dimension_numbers<[1], [0], [0], [1], [0, 0, 1, 1], [], []>} : vector<256x12xbf16>, vector<12x4xbf16>, vector<256x4xf32> -> vector<256x4xf32>
    %29 = arith.addf %24, %28 : vector<256x4xf32>
    %c0_13 = arith.constant 0 : index
    %c0_14 = arith.constant 0 : index
    %30 = vector.load %arg4[%c0_13, %c0_14] : memref<1x4xf32, #tpu.memory_space<vmem>>, vector<1x4xf32>
    %31 = vector.broadcast %30 : vector<1x4xf32> to vector<256x4xf32>
    %32 = arith.addf %29, %31 : vector<256x4xf32>
    %33 = vector.shape_cast %32 : vector<256x4xf32> to vector<16x16x4xf32>
    %c0_15 = arith.constant 0 : index
    %c0_16 = arith.constant 0 : index
    %c0_17 = arith.constant 0 : index
    %c0_18 = arith.constant 0 : index
    %34 = vector.load %arg5[%c0_15, %c0_16, %c0_17, %c0_18] : memref<1x16x16x4xf32, #tpu.memory_space<vmem>>, vector<1x16x16x4xf32>
    %35 = vector.shape_cast %34 : vector<1x16x16x4xf32> to vector<16x16x4xf32>
    %36 = vector.shape_cast %33 : vector<16x16x4xf32> to vector<1x16x16x4xf32>
    tpu.vector_store %arg5[%c0_15, %c0_16, %c0_17, %c0_18], %36 {strides = array<i32>} : memref<1x16x16x4xf32, #tpu.memory_space<vmem>>, vector<1x16x16x4xf32>,
    return
  }
  func.func @transform_0(%arg0: i32, %arg1: i32) -> (i32, i32, i32, i32) {
    %c0_i32 = arith.constant 0 : i32
    %c0_i32_0 = arith.constant 0 : i32
    %c0_i32_1 = arith.constant 0 : i32
    %c0_i32_2 = arith.constant 0 : i32
    return %arg0, %c0_i32, %c0_i32_0, %c0_i32_1 : i32, i32, i32, i32
  }
  func.func @transform_1(%arg0: i32, %arg1: i32) -> (i32, i32) {
    %c0_i32 = arith.constant 0 : i32
    %c0_i32_0 = arith.constant 0 : i32
    %c0_i32_1 = arith.constant 0 : i32
    return %c0_i32, %c0_i32_0 : i32, i32
  }
  func.func @transform_2(%arg0: i32, %arg1: i32) -> (i32, i32) {
    %c0_i32 = arith.constant 0 : i32
    %c0_i32_0 = arith.constant 0 : i32
    %c0_i32_1 = arith.constant 0 : i32
    return %c0_i32, %c0_i32_0 : i32, i32
  }
  func.func @transform_3(%arg0: i32, %arg1: i32) -> (i32, i32, i32, i32) {
    %c0_i32 = arith.constant 0 : i32
    %c0_i32_0 = arith.constant 0 : i32
    %c0_i32_1 = arith.constant 0 : i32
    return %arg0, %arg1, %c0_i32, %c0_i32_0 : i32, i32, i32, i32
  }
}

</mosaic_0001>

<bundles_post_ra>
// kernel: inception_block_forward.1
= control target key start
LH: loop header
LB: loop body
LE: loop exit
PB: predicated region body
PF: predicated region fallthrough
CT: control target
= control target key end

     0   :  { %s2680_s12 = smov 0   ;;  %s2682_s13 = smov 0   ;;  %s3368_s0 = inlined_call_operand.vmem [shape: bf16[2,20,18,4], index: 0, kind: input, shape index: {}]   ;;  %s3369_s1 = inlined_call_operand.vmem [shape: bf16[60,4], index: 1, kind: input, shape index: {}]   ;;  %s3370_s2 = inlined_call_operand.vmem [shape: f32[1,4], index: 2, kind: input, shape index: {}]   ;;  %s3371_s3 = inlined_call_operand.vmem [shape: f32[2,16,16,4], index: 3, kind: output, shape index: {}]  }
   0x1   :  { %s2684_s14 = smov 0  }
   0x2 LB: > { %s25_s15 = sadd.s32 1, %s2652_s13  ;;  %p2038_p0 = scmp.ge.s32.totalorder %s2656_s14, 1  ;;  %s2656_s14 = sphi %s2684_s14, %s13_s14   ;;  %s2652_s13 = sphi %s2682_s13, %s3373_s13   ;;  %s2648_s12 = sphi %s2680_s12, %s3372_s12  }
   0x3   : > { %p27_p1 = scmp.ge.s32.totalorder %s25_s15, 2  ;;  %p151_p2 = scmp.lt.s32.totalorder %s2656_s14, 3 }
   0x5   : > { %s3375_s15 = smov (%p27_p1, %s25_s15), 0  ;;  %p152_p3 = pnand %p2038_p0, %p151_p2 }
   0x6   : > { %p180_p4 = scmp.lt.s32.totalorder (!%p152_p3), %s2648_s12, 1  ;;  %vm698_vm0 = vcmask (!%p152_p3), 1046528   ;;  %vm417_vm1 = vsmask.f32 (!%p152_p3), 7424  ;;  %s2658_s20 = smov (!%p152_p3), 8   ;;  %vm924_vm2 = vcmask (!%p152_p3), 1045504  }
   0x7   : > { %155 = sbr.rel (%p152_p3) target bundleno = 524 (0x20c), region = 32  ;;  %s2659_s21 = smov (!%p152_p3), 4   ;;  %v2762_v57 = vld [vmem:[%s3369_s1 + $0x4] sm:$0xfc] (!%p152_p3)   ;;  %vm799_vm3 = vcmask (!%p152_p3), 31744   ;;  %vm840_vm4 = vcmask (!%p152_p3), 64512  }
   0x8   : > { %vm891_vm5 = vcmask (!%p152_p3), 97280  }
   0xe   : > { %s3377_s12 = smov (!%p180_p4, %s2648_s12), 1 }
   0xf   : > { %s2562_s16 = smul.u32 240, %s3377_s12  ;;  %s2170_s5 = sshll.u32 %s3377_s12, 8 }
  0x10   : > { %s3261_s10 = scalar_lea.vmem %s3371_s3, %s2170_s5 }
  0x11   : > { %s2704_s19 = scalar_lea.vmem %s3368_s0, %s2562_s16 }
  0x12   : > { %v2707_v0 = vld [vmem:[%s2704_s19 + $0xc] sm:$0xff]   ;;  %v2590_v1 = vld [vmem:[%s2704_s19 + $0x14] ss:$0 sps:$4 sm:$0x11]   ;;  %v2711_v2 = vld [vmem:[%s2704_s19 + $0x24] sm:$0xff]  }
  0x13   : > { %v702_v3 = vrot.slane %v2707_v0, 1  ;;  %v703_v4 = vrot.slane %v2590_v1, 1  ;;  %v431_v5 = vshrl.u32 %v2707_v0, 16  ;;  %v433_v6 = vshll.u32 %v2707_v0, 16  ;;  %v2721_v13 = vld [vmem:[%s2704_s19 + $0x18] sm:$0xff]   ;;  %v2734_v31 = vld [vmem:[%s2704_s19 + $0x30] sm:$0xff]  }
  0x14   : > { %v438_v7 = vshll.u32 %v2590_v1, 16  ;;  %v2592_v8 = vld [vmem:[%s2704_s19 + $0x2c] ss:$0 sps:$4 sm:$0x11]   ;;  %v455_v9 = vshrl.u32 %v2711_v2, 16  ;;  %v457_v10 = vshll.u32 %v2711_v2, 16 }
  0x15   : > { %v704_v11 = vsel %vm698_vm0, %v702_v3, %v703_v4  ;;  %v435_v12 = vrot.slane %v433_v6, 1  ;;  %v462_v16 = vshll.u32 %v2592_v8, 16  ;;  %v2594_v17 = vld [vmem:[%s2704_s19 + $0x20] ss:$0 sps:$4 sm:$0x11]   ;;  %v443_v19 = vshrl.u32 %v2721_v13, 16 }
  0x16   : > { %761 = vrot.lane.b32.xlu1 %v704_v11, %s2658_s20  ;;  %v440_v14 = vrot.slane %v438_v7, 1  ;;  %v459_v15 = vrot.slane %v457_v10, 1  ;;  %v445_v20 = vshll.u32 %v2721_v13, 16  ;;  %v708_v21 = vrot.slane %v2711_v2, 1  ;;  %v2729_v22 = vld [vmem:[%s2704_s19 + $0x3c] sm:$0xff]   ;;  %v2741_v36 = vld [vmem:[%s2704_s19 + $0x54] sm:$0xff]  }
  0x17   : > { %v436_v18 = vor.u32 %v435_v12, %v431_v5  ;;  %v464_v24 = vrot.slane %v462_v16, 1  ;;  %v450_v25 = vshll.u32 %v2594_v17, 16  ;;  %v709_v26 = vrot.slane %v2592_v8, 1  ;;  %v2596_v34 = vld [vmem:[%s2704_s19 + $0x44] ss:$0 sps:$4 sm:$0x11]  }
  0x18   : > { %v460_v23 = vor.u32 %v459_v15, %v455_v9  ;;  %v447_v28 = vrot.slane %v445_v20, 1  ;;  %v705_v29 = vrot.slane %v2721_v13, 1  ;;  %v706_v30 = vrot.slane %v2594_v17, 1  ;;  %v2598_v43 = vld [vmem:[%s2704_s19 + $0x38] ss:$0 sps:$4 sm:$0x11]  }
  0x19   : > { %v441_v27 = vsel %vm417_vm1, %v436_v18, %v440_v14  ;;  %v452_v33 = vrot.slane %v450_v25, 1  ;;  %v479_v35 = vshrl.u32 %v2729_v22, 16  ;;  %v481_v38 = vshll.u32 %v2729_v22, 16  ;;  %v2753_v48 = vld [vmem:[%s2704_s19 + $0x48] sm:$0xff]   ;;  %v2778_v14 = vld [vmem:[%s2704_s19 + $0x60] sm:$0xff]   ;;  %v2788_v20 = vld [vmem:[%s2704_s19 + $0x78] sm:$0xff]  }
  0x1a   : > { %660 = vrot.lane.b32.xlu0 %v441_v27, %s2659_s21  ;;  %v465_v32 = vsel %vm417_vm1, %v460_v23, %v464_v24  ;;  %v448_v37 = vor.u32 %v447_v28, %v443_v19  ;;  %v467_v39 = vshrl.u32 %v2734_v31, 16  ;;  %v710_v40 = vsel %vm698_vm0, %v708_v21, %v709_v26  ;;  %v2600_v59 = vld [vmem:[%s2704_s19 + $0x5c] ss:$0 sps:$4 sm:$0x11]   ;;  %v2775_v8 = vld [vmem:[%s2704_s19 + $0x6c] sm:$0xff]  }
  0x1b   : > { %664 = vrot.lane.b32.xlu1 %v465_v32, %s2659_s21  ;;  %v707_v41 = vsel %vm698_vm0, %v705_v29, %v706_v30  ;;  %v486_v42 = vshll.u32 %v2596_v34, 16  ;;  %v483_v45 = vrot.slane %v481_v38, 1  ;;  %v469_v46 = vshll.u32 %v2734_v31, 16  ;;  %v2602_v4 = vld [vmem:[%s2704_s19 + $0x50] ss:$0 sps:$4 sm:$0x11]  }
  0x1c   : > { %v453_v44 = vsel %vm417_vm1, %v448_v37, %v452_v33  ;;  %v714_v47 = vrot.slane %v2729_v22, 1  ;;  %v474_v50 = vshll.u32 %v2598_v43, 16  ;;  %v715_v51 = vrot.slane %v2596_v34, 1  ;;  %v2781_v15 = vld [vmem:[%s2704_s19 + $0x74] ss:$0 sps:$4 sm:$0x11]  }
  0x1d   : > { %v488_v49 = vrot.slane %v486_v42, 1  ;;  %v711_v52 = vrot.slane %v2734_v31, 1  ;;  %v484_v53 = vor.u32 %v483_v45, %v479_v35  ;;  %v471_v54 = vrot.slane %v469_v46, 1  ;;  %v2606_v29 = vld [vmem:[%s2704_s19 + $0x68] ss:$0 sps:$4 sm:$0x11]  }
  0x1e   : > { %662 = vrot.lane.b32.xlu0 %v453_v44, %s2659_s21  ;;  %v712_v55 = vrot.slane %v2598_v43, 1  ;;  %v503_v56 = vshrl.u32 %v2741_v36, 16  ;;  %v476_v58 = vrot.slane %v474_v50, 1  ;;  %v505_v60 = vshll.u32 %v2741_v36, 16  ;;  %v2800_v35 = vld [vmem:[%s2704_s19 + $0x84] sm:$0xff]  }
  0x1f   : > { %765 = vrot.lane.b32.xlu1 %v710_v40, %s2658_s20  ;;  %v491_v61 = vshrl.u32 %v2753_v48, 16  ;;  %v489_v62 = vsel %vm417_vm1, %v484_v53, %v488_v49  ;;  %v472_v63 = vor.u32 %v471_v54, %v467_v39  ;;  %v510_v3 = vshll.u32 %v2600_v59, 16  ;;  %v2804_v40 = vld [vmem:[%s2704_s19 + $0x90] sm:$0xff]   ;;  %v2608_v43 = vld [vmem:[%s2704_s19 + $0x80] ss:$0 sps:$4 sm:$0x11]  }
  0x20   : > { %v507_v1 = vrot.slane %v505_v60, 1  ;;  %v493_v5 = vshll.u32 %v2753_v48, 16  ;;  %v716_v7 = vsel %vm698_vm0, %v714_v47, %v715_v51  ;;  %v498_v12 = vshll.u32 %v2602_v4, 16 }
  0x21   : > { %v477_v6 = vsel %vm417_vm1, %v472_v63, %v476_v58  ;;  %v512_v10 = vrot.slane %v510_v3, 1  ;;  %v890_v16 = vrot.slane %v2762_v57, 2  ;;  %v713_v17 = vsel %vm698_vm0, %v711_v52, %v712_v55  ;;  %v2818_v55 = vld [vmem:[%s2704_s19 + $0x8c] ss:$0 sps:$4 sm:$0x11]   ;;  %v2822_v58 = vld [vmem:[%s2704_s19 + $0x9c] sm:$0xff]  }
  0x22   : > { %763 = vrot.lane.b32.xlu0 %v707_v41, %s2658_s20  ;;  %v508_v9 = vor.u32 %v507_v1, %v503_v56  ;;  %v495_v11 = vrot.slane %v493_v5, 1  ;;  %v720_v19 = vrot.slane %v2741_v36, 1  ;;  %v500_v21 = vrot.slane %v498_v12, 1 }
  0x23   : > { %668 = vrot.lane.b32.xlu1 %v489_v62, %s2659_s21  ;;  %v527_v23 = vshrl.u32 %v2775_v8, 16  ;;  %v529_v24 = vshll.u32 %v2775_v8, 16  ;;  %v534_v25 = vshll.u32 %v2781_v15, 16  ;;  %v721_v27 = vrot.slane %v2600_v59, 1  ;;  %2556 = vmatprep.subr.msk.bf16.mxu1 %vm924_vm2, %v890_v16 }
  0x24   : > { %v496_v18 = vor.u32 %v495_v11, %v491_v61  ;;  %v513_v26 = vsel %vm417_vm1, %v508_v9, %v512_v10  ;;  %v717_v28 = vrot.slane %v2753_v48, 1  ;;  %v517_v30 = vshll.u32 %v2778_v14, 16  ;;  %v2832_v9 = vld [vmem:[%s2704_s19 + $0x98] ss:$0 sps:$4 sm:$0x11]   ;;  %v2835_v10 = vld [vmem:[%s2704_s19 + $0xa8] sm:$0xff]  }
  0x25   : > { %v718_v32 = vrot.slane %v2602_v4, 1  ;;  %v531_v33 = vrot.slane %v529_v24, 1  ;;  %v515_v34 = vshrl.u32 %v2778_v14, 16  ;;  %v536_v37 = vrot.slane %v534_v25, 1 }
  0x26   : > { %666 = vrot.lane.b32.xlu0 %v477_v6, %s2659_s21  ;;  %v519_v38 = vrot.slane %v517_v30, 1  ;;  %v522_v39 = vshll.u32 %v2606_v29, 16  ;;  %v501_v41 = vsel %vm417_vm1, %v496_v18, %v500_v21  ;;  %v541_v44 = vshll.u32 %v2788_v20, 16 }
  0x27   : > { %769 = vrot.lane.b32.xlu1 %v716_v7, %s2658_s20  ;;  %v532_v42 = vor.u32 %v531_v33, %v527_v23  ;;  %v722_v45 = vsel %vm698_vm0, %v720_v19, %v721_v27  ;;  %v726_v46 = vrot.slane %v2775_v8, 1  ;;  %v727_v47 = vrot.slane %v2781_v15, 1  ;;  %v2846_v23 = vld [vmem:[%s2704_s19 + $0xa4] ss:$0 sps:$4 sm:$0x11]   ;;  %v2856_v33 = vld [vmem:[%s2704_s19 + $0xb4] sm:$0xff]  }
  0x28   : > { %v723_v49 = vrot.slane %v2778_v14, 1  ;;  %v724_v50 = vrot.slane %v2606_v29, 1  ;;  %v539_v51 = vshrl.u32 %v2788_v20, 16  ;;  %v546_v52 = vshll.u32 %v2608_v43, 16 }
  0x29   : > { %v719_v53 = vsel %vm698_vm0, %v717_v28, %v718_v32  ;;  %v524_v54 = vrot.slane %v522_v39, 1  ;;  %v553_v56 = vshll.u32 %v2800_v35, 16  ;;  %v537_v59 = vsel %vm417_vm1, %v532_v42, %v536_v37  ;;  %v2616_v27 = vld [vmem:[%s2704_s19 + $0xb0] ss:$0 sps:$4 sm:$0x11]  }
  0x2a   : > { %767 = vrot.lane.b32.xlu0 %v713_v17, %s2658_s20  ;;  %v520_v60 = vor.u32 %v519_v38, %v515_v34  ;;  %v543_v61 = vrot.slane %v541_v44, 1  ;;  %v729_v62 = vrot.slane %v2788_v20, 1  ;;  %v730_v63 = vrot.slane %v2608_v43, 1 }
  0x2b   : > { %672 = vrot.lane.b32.xlu1 %v513_v26, %s2659_s21  ;;  %v551_v1 = vshrl.u32 %v2800_v35, 16  ;;  %v563_v3 = vshrl.u32 %v2804_v40, 16  ;;  %v565_v4 = vshll.u32 %v2804_v40, 16  ;;  %v548_v5 = vrot.slane %v546_v52, 1 }
  0x2c   : > { %v555_v6 = vrot.slane %v553_v56, 1  ;;  %v558_v7 = vshll.u32 %v2818_v55, 16  ;;  %v732_v11 = vrot.slane %v2800_v35, 1  ;;  %v733_v12 = vrot.slane %v2818_v55, 1 }
  0x2d   : > { %v525_v15 = vsel %vm417_vm1, %v520_v60, %v524_v54  ;;  %v570_v17 = vshll.u32 %v2832_v9, 16  ;;  %v577_v18 = vshll.u32 %v2822_v58, 16  ;;  %v728_v19 = vsel %vm698_vm0, %v726_v46, %v727_v47 }
  0x2e   : > { %670 = vrot.lane.b32.xlu0 %v501_v41, %s2659_s21  ;;  %v567_v21 = vrot.slane %v565_v4, 1  ;;  %v725_v24 = vsel %vm698_vm0, %v723_v49, %v724_v50  ;;  %v544_v25 = vor.u32 %v543_v61, %v539_v51  ;;  %v735_v26 = vrot.slane %v2804_v40, 1  ;;  %v2868_v49 = vld [vmem:[%s2704_s19 + $0xbc] ss:$0 sps:$4 sm:$0x11]  }
  0x2f   : > { %773 = vrot.lane.b32.xlu1 %v722_v45, %s2658_s20  ;;  %v731_v28 = vsel %vm698_vm0, %v729_v62, %v730_v63  ;;  %v560_v29 = vrot.slane %v558_v7, 1  ;;  %v575_v30 = vshrl.u32 %v2822_v58, 16  ;;  %v582_v32 = vshll.u32 %v2846_v23, 16  ;;  %v2864_v45 = vld [vmem:[%s2704_s19 + $0xc0] sm:$0xff]  }
  0x30   : > { %v572_v34 = vrot.slane %v570_v17, 1  ;;  %v736_v37 = vrot.slane %v2832_v9, 1  ;;  %v579_v38 = vrot.slane %v577_v18, 1  ;;  %v589_v39 = vshll.u32 %v2835_v10, 16  ;;  %v2892_v17 = vld [vmem:[%s2704_s19 + $0xcc] sm:$0xff]   ;;  %v2895_v18 = vld [vmem:[%s2704_s19 + $0xd8] sm:$0xff]  }
  0x31   : > { %v568_v41 = vor.u32 %v567_v21, %v563_v3  ;;  %v587_v42 = vshrl.u32 %v2835_v10, 16  ;;  %v594_v43 = vshll.u32 %v2616_v27, 16  ;;  %v738_v44 = vrot.slane %v2822_v58, 1  ;;  %v2882_v3 = vld [vmem:[%s2704_s19] sm:$0xff]  }
  0x32   : > { %771 = vrot.lane.b32.xlu0 %v719_v53, %s2658_s20  ;;  %v584_v46 = vrot.slane %v582_v32, 1  ;;  %v739_v47 = vrot.slane %v2846_v23, 1  ;;  %v601_v50 = vshll.u32 %v2856_v33, 16  ;;  %v549_v51 = vsel %vm417_vm1, %v544_v25, %v548_v5 }
  0x33   : > { %676 = vrot.lane.b32.xlu1 %v537_v59, %s2659_s21  ;;  %v556_v52 = vor.u32 %v555_v6, %v551_v1  ;;  %v591_v53 = vrot.slane %v589_v39, 1  ;;  %v741_v54 = vrot.slane %v2835_v10, 1  ;;  %v742_v56 = vrot.slane %v2616_v27, 1  ;;  %v2876_v59 = vld [vmem:[%s2704_s19 + $0xc8] ss:$0 sps:$4 sm:$0x11]  }
  0x34   : > { %v573_v60 = vsel %vm417_vm1, %v568_v41, %v572_v34  ;;  %v596_v61 = vrot.slane %v594_v43, 1  ;;  %v599_v62 = vshrl.u32 %v2856_v33, 16  ;;  %v613_v63 = vshll.u32 %v2864_v45, 16  ;;  %v2624_v39 = vld [vmem:[%s2704_s19 + $0xd4] ss:$0 sps:$4 sm:$0x11]  }
  0x35   : > { %v2884_v4 = vrot.slane %v601_v50, 1  ;;  %v606_v1 = vshll.u32 %v2868_v49, 16  ;;  %v611_v5 = vshrl.u32 %v2864_v45, 16  ;;  %v618_v6 = vshll.u32 %v2876_v59, 16  ;;  %v2923_v50 = vld [vmem:[%s3369_s1 + $0xc] sm:$0x3f]  }
  0x36   : > { %674 = vrot.lane.b32.xlu0 %v525_v15, %s2659_s21  ;;  %v580_v7 = vor.u32 %v579_v38, %v575_v30  ;;  %v615_v9 = vrot.slane %v613_v63, 1  ;;  %v419_v15 = vshrl.u32 %v2882_v3, 16  ;;  %v421_v25 = vshll.u32 %v2882_v3, 16  ;;  %2558 = vmatprep.subr.msk.bf16.mxu0 %vm924_vm2, %v2923_v50 }
  0x37   : > { %777 = vrot.lane.b32.xlu1 %v728_v19, %s2658_s20  ;;  %v561_v19 = vsel %vm417_vm1, %v556_v52, %v560_v29  ;;  %v2899_v21 = vrot.slane %v618_v6, 1  ;;  %v699_v27 = vrot.slane %v2882_v3, 1  ;;  %v592_v30 = vor.u32 %v591_v53, %v587_v42  ;;  %v2626_v52 = vld [vmem:[%s2704_s19 + $0xe0] ss:$0 sps:$4 sm:$0x11]  }
  0x38   : > { %v734_v32 = vsel %vm698_vm0, %v732_v11, %v733_v12  ;;  %v423_v34 = vrot.slane %v421_v25, 1  ;;  %v585_v41 = vsel %vm417_vm1, %v580_v7, %v584_v46  ;;  %v743_v43 = vsel %vm698_vm0, %v741_v54, %v742_v56  ;;  %v2939_v25 = vld [vmem:[%s2704_s19 + $0xe4] sm:$0xff]  }
  0x39   : > { %v630_v12 = vshll.u32 %v2624_v39, 16  ;;  %v597_v46 = vsel %vm417_vm1, %v592_v30, %v596_v61  ;;  %v635_v53 = vshrl.u32 %v2895_v18, 16  ;;  %v637_v54 = vshll.u32 %v2895_v18, 16  ;;  %v2936_v61 = vld [vmem:[%s3369_s1 + $0x10] sm:$0xfc]  }
  0x3a   : > { %775 = vrot.lane.b32.xlu0 %v725_v24, %s2658_s20  ;;  %v2622_v24 = vld [vmem:[%s2704_s19 + $0x8] ss:$0 sps:$4 sm:$0x11]   ;;  %v424_v55 = vor.u32 %v423_v34, %v419_v15  ;;  %v750_v63 = vrot.slane %v2892_v17, 1  ;;  %v751_v6 = vrot.slane %v2624_v39, 1  ;;  %v754_v30 = vrot.slane %v2626_v52, 1 }
  0x3b   : > { %779 = vrot.lane.b32.xlu1 %v731_v28, %s2658_s20  ;;  %v737_v28 = vsel %vm698_vm0, %v735_v26, %v736_v37  ;;  %v426_v29 = vshll.u32 %v2622_v24, 16  ;;  %v700_v38 = vrot.slane %v2622_v24, 1  ;;  %v623_v26 = vshrl.u32 %v2892_v17, 16 }
  0x3c   : > { %v625_v37 = vshll.u32 %v2892_v17, 16  ;;  %v639_v15 = vrot.slane %v637_v54, 1  ;;  %v753_v24 = vrot.slane %v2895_v18, 1  ;;  %v604_v57 = vor.u32 %v2884_v4, %v599_v62 }
  0x3d   : > { %v428_v42 = vrot.slane %v426_v29, 1  ;;  %v2918_v11 = vsel %vm698_vm0, %v699_v27, %v700_v38  ;;  %v616_v27 = vor.u32 %v615_v9, %v611_v5  ;;  %v926_v5 = vsel %vm924_vm2, %v890_v16, 0 }
  0x3e   : > { %678 = vrot.lane.b32.xlu0 %v549_v51, %s2659_s21  ;;  %v627_v51 = vrot.slane %v625_v37, 1  ;;  %v640_v29 = vor.u32 %v639_v15, %v635_v53  ;;  %v740_v9 = vsel %vm698_vm0, %v738_v44, %v739_v47  ;;  %v755_v39 = vsel %vm698_vm0, %v753_v24, %v754_v30  ;;  %2257 = vmatpush3.bf16.msra.mxu1 %v926_v5 }
  0x3f   : > { %682 = vrot.lane.b32.xlu1 %v573_v60, %s2659_s21  ;;  %v429_v56 = vsel %vm417_vm1, %v424_v55, %v428_v42  ;;  %v632_v60 = vrot.slane %v630_v12, 1  ;;  %v1472_v37 = vrot.slane %v2936_v61, 2  ;;  %v2633_v55 = vld [vmem:[%s2704_s19 + $0xec] ss:$0 sps:$4 sm:$0x11]   ;;  %v647_v23 = vshrl.u32 %v2939_v25, 16 }
  0x40   : > { %v628_v7 = vor.u32 %v627_v51, %v623_v26  ;;  %v2965_v26 = vsel %vm924_vm2, %v2923_v50, 0  ;;  %v649_v44 = vshll.u32 %v2939_v25, 16  ;;  %v608_v47 = vrot.slane %v606_v1, 1 }
  0x41   : > { %2325 = vmatpush3.bf16.msra.mxu0 %v2965_v26  ;;  %v756_v42 = vrot.slane %v2939_v25, 1  ;;  %v757_v62 = vrot.slane %v2633_v55, 1  ;;  %v621_v4 = vsel %vm417_vm1, %v616_v27, %v2899_v21  ;;  %v747_v12 = vrot.slane %v2864_v45, 1 }
  0x42   : > { %680 = vrot.lane.b32.xlu0 %v561_v19, %s2659_s21  ;;  %v642_v19 = vshll.u32 %v2626_v52, 16  ;;  %v633_v34 = vsel %vm417_vm1, %v628_v7, %v632_v60  ;;  %2560 = vmatprep.subr.msk.bf16.mxu0 %vm924_vm2, %v1472_v37  ;;  %v609_v53 = vsel %vm417_vm1, %v604_v57, %v608_v47  ;;  %v744_v54 = vrot.slane %v2856_v33, 1 }
  0x43   : > { %783 = vrot.lane.b32.xlu1 %v737_v28, %s2658_s20  ;;  %v752_v28 = vsel %vm698_vm0, %v750_v63, %v751_v6  ;;  %v758_v1 = vsel %vm698_vm0, %v756_v42, %v757_v62  ;;  %v745_v21 = vrot.slane %v2868_v49, 1 }
  0x44   : > { %v644_v38 = vrot.slane %v642_v19, 1 }
  0x45   : > { %v746_v63 = vsel %vm698_vm0, %v744_v54, %v745_v21 }
  0x46   : > { %781 = vrot.lane.b32.xlu0 %v734_v32, %s2658_s20  ;;  %v2946_v32 = vld [vmem:[%s3369_s1] sm:$0x3f]   ;;  %v645_v16 = vsel %vm417_vm1, %v640_v29, %v644_v38 }
  0x47   : > { %686 = vrot.lane.b32.xlu1 %v597_v46, %s2659_s21  ;;  %2557 = vmatprep.subr.msk.bf16.mxu1 %vm924_vm2, %v2946_v32  ;;  %v748_v46 = vrot.slane %v2876_v59, 1 }
  0x49   : > { %v749_v60 = vsel %vm698_vm0, %v747_v12, %v748_v46 }
  0x4a   : > { %684 = vrot.lane.b32.xlu0 %v585_v41, %s2659_s21  ;;  %v654_v41 = vshll.u32 %v2633_v55, 16 }
  0x4b   : > { %787 = vrot.lane.b32.xlu1 %v743_v43, %s2658_s20  ;;  %v651_v43 = vrot.slane %v649_v44, 1 }
  0x4c   : > { %v656_v51 = vrot.slane %v654_v41, 1 }
  0x4d   : > { %v652_v52 = vor.u32 %v651_v43, %v647_v23 }
  0x4e   : > { %785 = vrot.lane.b32.xlu0 %v740_v9, %s2658_s20 }
  0x4f   : > { %690 = vrot.lane.b32.xlu1 %v621_v4, %s2659_s21  ;;  %v657_v59 = vsel %vm417_vm1, %v652_v52, %v656_v51 }
  0x52   : > { %688 = vrot.lane.b32.xlu0 %v609_v53, %s2659_s21 }
  0x53   : > { %791 = vrot.lane.b32.xlu1 %v749_v60, %s2658_s20 }
  0x56   : > { %789 = vrot.lane.b32.xlu0 %v746_v63, %s2658_s20 }
  0x57   : > { %759 = vrot.lane.b32.xlu1 %v2918_v11, %s2658_s20 }
  0x5a   : > { %658 = vrot.lane.b32.xlu0 %v429_v56, %s2659_s21 }
  0x5b   : > { %694 = vrot.lane.b32.xlu1 %v645_v16, %s2659_s21 }
  0x5e   : > { %692 = vrot.lane.b32.xlu0 %v633_v34, %s2659_s21 }
  0x5f   : > { %795 = vrot.lane.b32.xlu1 %v755_v39, %s2658_s20 }
  0x62   : > { %793 = vrot.lane.b32.xlu0 %v752_v28, %s2658_s20  ;;  %v1097_v28 = vsel %vm924_vm2, %v2946_v32, 0 }
  0x63   : > { %797 = vrot.lane.b32.xlu1 %v758_v1, %s2658_s20 }
  0x66   : > { %696 = vrot.lane.b32.xlu0 %v657_v59, %s2659_s21 }
  0x88   : > { %v762_v49 = vpop.permute.xlu1 %761 }
  0x8c   : > { %v661_v6 = vpop.permute.xlu0 %660 }
  0x8d   : > { %v803_v11 = vsel %vm799_vm3, %v2707_v0, %v661_v6  ;;  %v665_v56 = vpop.permute.xlu1 %664 }
  0x8e   : > { %v3012_v7 = vsel %vm840_vm4, %v803_v11, %v762_v49  ;;  %v807_v24 = vsel %vm799_vm3, %v2711_v2, %v665_v56  ;;  %v1476_v2 = vsel %vm924_vm2, %v1472_v37, 0 }
  0x8f   : > { %2258 = vmatprep.mubr.msk.bf16.mxu1 %vm891_vm5, %v3012_v7 }
  0x90   : > { %v663_v15 = vpop.permute.xlu0 %662 }
  0x91   : > { %v766_v19 = vpop.permute.xlu1 %765  ;;  %v805_v61 = vsel %vm799_vm3, %v2721_v13, %v663_v15  ;;  %v2631_v13 = vld [vmem:[%s3369_s1 + $0x18] sm:$0x3f]  }
  0x92   : > { %v3026_v34 = vsel %vm840_vm4, %v807_v24, %v766_v19  ;;  %v1681_v54 = vsel %vm924_vm2, %v2631_v13, 0 }
  0x94   : > { %v764_v27 = vpop.permute.xlu0 %763 }
  0x95   : > { %v3023_v0 = vsel %vm840_vm4, %v805_v61, %v764_v27  ;;  %v669_v30 = vpop.permute.xlu1 %668 }
  0x96   : > { %2259 = vmatmul.mubr.msk.bf16.vlgmr.msra.gmra.mrb[0].mxu1 %vm891_vm5, %v3023_v0  ;;  %2326 = vmatprep.mubr.msk.bf16.mxu0 %vm891_vm5, %v3023_v0  ;;  %v811_v38 = vsel %vm799_vm3, %v2729_v22, %v669_v30 }
  0x97   : > { %2262 = vmatprep.mubr.msk.bf16.mxu1 %vm891_vm5, %v3026_v34  ;;  %2291 = vmatpush3.bf16.msra.mxu1 %v1097_v28 }
  0x98   : > { %2327 = vmatmul.mubr.msk.bf16.vlgmr.msra.gmra.mrb[0].mxu0 %vm891_vm5, %v3026_v34  ;;  %v667_v32 = vpop.permute.xlu0 %666  ;;  %2559 = vmatprep.subr.msk.bf16.mxu1 %vm924_vm2, %v2923_v50 }
  0x99   : > { %2359 = vmatpush3.bf16.msra.mxu0 %v1476_v2  ;;  %v770_v29 = vpop.permute.xlu1 %769  ;;  %v809_v5 = vsel %vm799_vm3, %v2734_v31, %v667_v32 }
  0x9a   : > { %2561 = vmatprep.subr.msk.bf16.mxu0 %vm924_vm2, %v2631_v13  ;;  %v3051_v55 = vsel %vm840_vm4, %v811_v38, %v770_v29 }
  0x9c   : > { %v768_v9 = vpop.permute.xlu0 %767 }
  0x9d   : > { %v3048_v39 = vsel %vm840_vm4, %v809_v5, %v768_v9  ;;  %v673_v37 = vpop.permute.xlu1 %672 }
  0x9e   : > { %2263 = vmatmul.mubr.msk.bf16.gmra.mrb[4].mxu1 %vm891_vm5, %v3048_v39  ;;  %2330 = vmatprep.mubr.msk.bf16.mxu0 %vm891_vm5, %v3048_v39  ;;  %v815_v50 = vsel %vm799_vm3, %v2741_v36, %v673_v37 }
  0x9f   : > { %2266 = vmatprep.mubr.msk.bf16.mxu1 %vm891_vm5, %v3051_v55 }
  0xa0   : > { %2331 = vmatmul.mubr.msk.bf16.gmra.mrb[4].mxu0 %vm891_vm5, %v3051_v55  ;;  %v671_v22 = vpop.permute.xlu0 %670 }
  0xa1   : > { %v774_v31 = vpop.permute.xlu1 %773  ;;  %v813_v57 = vsel %vm799_vm3, %v2753_v48, %v671_v22 }
  0xa2   : > { %v3069_v47 = vsel %vm840_vm4, %v815_v50, %v774_v31 }
  0xa4   : > { %v772_v16 = vpop.permute.xlu0 %771 }
  0xa5   : > { %v3066_v23 = vsel %vm840_vm4, %v813_v57, %v772_v16  ;;  %v677_v44 = vpop.permute.xlu1 %676 }
  0xa6   : > { %2267 = vmatmul.mubr.msk.bf16.gmra.mrb[8].mxu1 %vm891_vm5, %v3066_v23  ;;  %2334 = vmatprep.mubr.msk.bf16.mxu0 %vm891_vm5, %v3066_v23  ;;  %v819_v41 = vsel %vm799_vm3, %v2775_v8, %v677_v44 }
  0xa7   : > { %2270 = vmatprep.mubr.msk.bf16.mxu1 %vm891_vm5, %v3069_v47 }
  0xa8   : > { %2335 = vmatmul.mubr.msk.bf16.gmra.mrb[8].mxu0 %vm891_vm5, %v3069_v47  ;;  %v675_v36 = vpop.permute.xlu0 %674 }
  0xa9   : > { %v778_v48 = vpop.permute.xlu1 %777  ;;  %v817_v42 = vsel %vm799_vm3, %v2778_v14, %v675_v36 }
  0xaa   : > { %v3087_v46 = vsel %vm840_vm4, %v819_v41, %v778_v48 }
  0xac   : > { %v776_v62 = vpop.permute.xlu0 %775 }
  0xad   : > { %v3084_v4 = vsel %vm840_vm4, %v817_v42, %v776_v62  ;;  %v780_v12 = vpop.permute.xlu1 %779 }
  0xae   : > { %2271 = vmatmul.mubr.msk.bf16.gmra.mrb[12].mxu1 %vm891_vm5, %v3084_v4  ;;  %2338 = vmatprep.mubr.msk.bf16.mxu0 %vm891_vm5, %v3084_v4 }
  0xaf   : > { %2274 = vmatprep.mubr.msk.bf16.mxu1 %vm891_vm5, %v3087_v46 }
  0xb0   : > { %2339 = vmatmul.mubr.msk.bf16.gmra.mrb[12].mxu0 %vm891_vm5, %v3087_v46  ;;  %v679_v8 = vpop.permute.xlu0 %678 }
  0xb1   : > { %2360 = vmatprep.mubr.msk.bf16.mxu0 %vm891_vm5, %v3026_v34  ;;  %v821_v14 = vsel %vm799_vm3, %v2788_v20, %v679_v8  ;;  %v683_v43 = vpop.permute.xlu1 %682 }
  0xb2   : > { %v3102_v51 = vsel %vm840_vm4, %v821_v14, %v780_v12 }
  0xb4   : > { %v681_v1 = vpop.permute.xlu0 %680 }
  0xb5   : > { %v784_v52 = vpop.permute.xlu1 %783  ;;  %v823_v53 = vsel %vm799_vm3, %v2800_v35, %v681_v1  ;;  %v825_v35 = vsel %vm799_vm3, %v2804_v40, %v683_v43 }
  0xb6   : > { %2275 = vmatmul.mubr.msk.bf16.gmra.mrb[16].mxu1 %vm891_vm5, %v3102_v51  ;;  %v3121_v63 = vsel %vm840_vm4, %v825_v35, %v784_v52 }
  0xb8   : > { %2361 = vmatmul.mubr.msk.bf16.vlgmr.msra.gmra.mrb[0].mxu0 %vm891_vm5, %v3048_v39  ;;  %v782_v21 = vpop.permute.xlu0 %781 }
  0xb9   : > { %2393 = vmatpush3.bf16.msra.mxu0 %v1681_v54  ;;  %2364 = vmatprep.mubr.msk.bf16.mxu0 %vm891_vm5, %v3051_v55  ;;  %v3114_v20 = vsel %vm840_vm4, %v823_v53, %v782_v21  ;;  %v687_v60 = vpop.permute.xlu1 %686 }
  0xba   : > { %2278 = vmatprep.mubr.msk.bf16.mxu1 %vm891_vm5, %v3114_v20  ;;  %v829_v15 = vsel %vm799_vm3, %v2835_v10, %v687_v60 }
  0xbc   : > { %v685_v59 = vpop.permute.xlu0 %684 }
  0xbd   : > { %v788_v49 = vpop.permute.xlu1 %787  ;;  %v827_v6 = vsel %vm799_vm3, %v2822_v58, %v685_v59 }
  0xbe   : > { %2279 = vmatmul.mubr.msk.bf16.gmra.mrb[20].mxu1 %vm891_vm5, %v3121_v63  ;;  %v3139_v19 = vsel %vm840_vm4, %v829_v15, %v788_v49 }
  0xc0   : > { %2365 = vmatmul.mubr.msk.bf16.gmra.mrb[4].mxu0 %vm891_vm5, %v3066_v23  ;;  %v786_v11 = vpop.permute.xlu0 %785 }
  0xc1   : > { %2368 = vmatprep.mubr.msk.bf16.mxu0 %vm891_vm5, %v3069_v47  ;;  %v3132_v40 = vsel %vm840_vm4, %v827_v6, %v786_v11  ;;  %v691_v56 = vpop.permute.xlu1 %690 }
  0xc2   : > { %2282 = vmatprep.mubr.msk.bf16.mxu1 %vm891_vm5, %v3132_v40  ;;  %v833_v28 = vsel %vm799_vm3, %v2864_v45, %v691_v56 }
  0xc4   : > { %v689_v58 = vpop.permute.xlu0 %688 }
  0xc5   : > { %v831_v24 = vsel %vm799_vm3, %v2856_v33, %v689_v58  ;;  %v792_v61 = vpop.permute.xlu1 %791 }
  0xc6   : > { %2283 = vmatmul.mubr.msk.bf16.gmra.mrb[24].mxu1 %vm891_vm5, %v3139_v19  ;;  %v874_v2 = vsel %vm840_vm4, %v833_v28, %v792_v61 }
  0xc8   : > { %2369 = vmatmul.mubr.msk.bf16.gmra.mrb[8].mxu0 %vm891_vm5, %v3084_v4  ;;  %v790_v27 = vpop.permute.xlu0 %789 }
  0xc9   : > { %2372 = vmatprep.mubr.msk.bf16.mxu0 %vm891_vm5, %v3087_v46  ;;  %v872_v10 = vsel %vm840_vm4, %v831_v24, %v790_v27  ;;  %v760_v30 = vpop.permute.xlu1 %759 }
  0xca   : > { %2286 = vmatprep.mubr.msk.bf16.mxu1 %vm891_vm5, %v872_v10 }
  0xcc   : > { %v659_v33 = vpop.permute.xlu0 %658 }
  0xcd   : > { %v801_v13 = vsel %vm799_vm3, %v2882_v3, %v659_v33 }
  0xce   : > { %2287 = vmatmul.mubr.msk.bf16.gmra.mrb[28].mxu1 %vm891_vm5, %v874_v2  ;;  %v842_v32 = vsel %vm840_vm4, %v801_v13, %v760_v30 }
  0xcf   : > { %2292 = vmatprep.mubr.msk.bf16.mxu1 %vm891_vm5, %v842_v32 }
  0xd0   : > { %2373 = vmatmul.mubr.msk.bf16.gmra.mrb[12].mxu0 %vm891_vm5, %v3102_v51  ;;  %v693_v45 = vpop.permute.xlu0 %692 }
  0xd1   : > { %2376 = vmatprep.mubr.msk.bf16.mxu0 %vm891_vm5, %v3114_v20  ;;  %v835_v3 = vsel %vm799_vm3, %v2892_v17, %v693_v45 }
  0xd6   : > { %2293 = vmatmul.mubr.msk.bf16.vlgmr.msra.gmra.mrb[0].mxu1 %vm891_vm5, %v3012_v7  ;;  %v695_v7 = vpop.permute.xlu1 %694 }
  0xd7   : > { %2296 = vmatprep.mubr.msk.bf16.mxu1 %vm891_vm5, %v3023_v0  ;;  %2427 = vmatpush3.bf16.msra.mxu1 %v2965_v26  ;;  %v794_v26 = vpop.permute.xlu0 %793 }
  0xd8   : > { %2377 = vmatmul.mubr.msk.bf16.gmra.mrb[16].mxu0 %vm891_vm5, %v3121_v63  ;;  %v876_v0 = vsel %vm840_vm4, %v835_v3, %v794_v26 }
  0xd9   : > { %2380 = vmatprep.mubr.msk.bf16.mxu0 %vm891_vm5, %v3132_v40 }
  0xda   : > { %v796_v29 = vpop.permute.xlu1 %795 }
  0xde   : > { %2297 = vmatmul.mubr.msk.bf16.gmra.mrb[4].mxu1 %vm891_vm5, %v3026_v34  ;;  %v837_v34 = vsel %vm799_vm3, %v2895_v18, %v695_v7  ;;  %v697_v18 = vpop.permute.xlu0 %696  ;;  %v798_v5 = vpop.permute.xlu1 %797 }
  0xdf   : > { %2300 = vmatprep.mubr.msk.bf16.mxu1 %vm891_vm5, %v3048_v39  ;;  %v878_v17 = vsel %vm840_vm4, %v837_v34, %v796_v29  ;;  %v839_v38 = vsel %vm799_vm3, %v2939_v25, %v697_v18 }
  0xe0   : > { %2381 = vmatmul.mubr.msk.bf16.gmra.mrb[20].mxu0 %vm891_vm5, %v3139_v19  ;;  %v880_v9 = vsel %vm840_vm4, %v839_v38, %v798_v5 }
  0xe1   : > { %2384 = vmatprep.mubr.msk.bf16.mxu0 %vm891_vm5, %v872_v10 }
  0xe6   : > { %2301 = vmatmul.mubr.msk.bf16.gmra.mrb[8].mxu1 %vm891_vm5, %v3051_v55 }
  0xe7   : > { %2304 = vmatprep.mubr.msk.bf16.mxu1 %vm891_vm5, %v3066_v23 }
  0xe8   : > { %2385 = vmatmul.mubr.msk.bf16.gmra.mrb[24].mxu0 %vm891_vm5, %v874_v2 }
  0xe9   : > { %2388 = vmatprep.mubr.msk.bf16.mxu0 %vm891_vm5, %v876_v0 }
  0xee   : > { %2305 = vmatmul.mubr.msk.bf16.gmra.mrb[12].mxu1 %vm891_vm5, %v3069_v47 }
  0xef   : > { %2308 = vmatprep.mubr.msk.bf16.mxu1 %vm891_vm5, %v3084_v4 }
  0xf0   : > { %2389 = vmatmul.mubr.msk.bf16.gmra.mrb[28].mxu0 %vm891_vm5, %v878_v17 }
  0xf1   : > { %2394 = vmatprep.mubr.msk.bf16.mxu0 %vm891_vm5, %v3048_v39 }
  0xf6   : > { %2309 = vmatmul.mubr.msk.bf16.gmra.mrb[16].mxu1 %vm891_vm5, %v3087_v46 }
  0xf7   : > { %2312 = vmatprep.mubr.msk.bf16.mxu1 %vm891_vm5, %v3102_v51 }
  0xf8   : > { %2395 = vmatmul.mubr.msk.bf16.vlgmr.msra.gmra.mrb[0].mxu0 %vm891_vm5, %v3051_v55 }
  0xf9   : > { %2398 = vmatprep.mubr.msk.bf16.mxu0 %vm891_vm5, %v3066_v23 }
  0xfe   : > { %2313 = vmatmul.mubr.msk.bf16.gmra.mrb[20].mxu1 %vm891_vm5, %v3114_v20 }
  0xff   : > { %2316 = vmatprep.mubr.msk.bf16.mxu1 %vm891_vm5, %v3121_v63 }
 0x100   : > { %2399 = vmatmul.mubr.msk.bf16.gmra.mrb[4].mxu0 %vm891_vm5, %v3069_v47 }
 0x101   : > { %2402 = vmatprep.mubr.msk.bf16.mxu0 %vm891_vm5, %v3084_v4  ;;  %v3256_v4 = vld [vmem:[%s3370_s2] ss:$0 sm:$0xff] }
 0x106   : > { %2317 = vmatmul.mubr.msk.bf16.gmra.mrb[24].mxu1 %vm891_vm5, %v3132_v40 }
 0x107   : > { %2320 = vmatprep.mubr.msk.bf16.mxu1 %vm891_vm5, %v3139_v19 }
 0x108   : > { %2403 = vmatmul.mubr.msk.bf16.gmra.mrb[8].mxu0 %vm891_vm5, %v3087_v46 }
 0x109   : > { %2406 = vmatprep.mubr.msk.bf16.mxu0 %vm891_vm5, %v3102_v51 }
 0x10e   : > { %2321 = vmatmul.mubr.msk.bf16.gmra.mrb[28].mxu1 %vm891_vm5, %v872_v10 }
 0x10f   : > { %2342 = vmatprep.mubr.msk.bf16.mxu1 %vm891_vm5, %v3102_v51 }
 0x110   : > { %2407 = vmatmul.mubr.msk.bf16.gmra.mrb[12].mxu0 %vm891_vm5, %v3114_v20 }
 0x111   : > { %2410 = vmatprep.mubr.msk.bf16.mxu0 %vm891_vm5, %v3121_v63 }
 0x116   : > { %2343 = vmatmul.mubr.msk.bf16.vlgmr.msra.gmra.mrb[16].mxu1 %vm891_vm5, %v3114_v20 }
 0x117   : > { %2346 = vmatprep.mubr.msk.bf16.mxu1 %vm891_vm5, %v3121_v63 }
 0x118   : > { %2411 = vmatmul.mubr.msk.bf16.gmra.mrb[16].mxu0 %vm891_vm5, %v3132_v40 }
 0x119   : > { %2414 = vmatprep.mubr.msk.bf16.mxu0 %vm891_vm5, %v3139_v19 }
 0x11e   : > { %2347 = vmatmul.mubr.msk.bf16.gmra.mrb[20].mxu1 %vm891_vm5, %v3132_v40 }
 0x11f   : > { %2350 = vmatprep.mubr.msk.bf16.mxu1 %vm891_vm5, %v3139_v19 }
 0x120   : > { %2415 = vmatmul.mubr.msk.bf16.gmra.mrb[20].mxu0 %vm891_vm5, %v872_v10 }
 0x121   : > { %2418 = vmatprep.mubr.msk.bf16.mxu0 %vm891_vm5, %v874_v2 }
 0x126   : > { %2351 = vmatmul.mubr.msk.bf16.gmra.mrb[24].mxu1 %vm891_vm5, %v872_v10 }
 0x127   : > { %2354 = vmatprep.mubr.msk.bf16.mxu1 %vm891_vm5, %v874_v2 }
 0x128   : > { %2419 = vmatmul.mubr.msk.bf16.gmra.mrb[24].mxu0 %vm891_vm5, %v876_v0 }
 0x129   : > { %2422 = vmatprep.mubr.msk.bf16.mxu0 %vm891_vm5, %v878_v17 }
 0x12e   : > { %2355 = vmatmul.mubr.msk.bf16.gmra.mrb[28].mxu1 %vm891_vm5, %v876_v0 }
 0x130   : > { %2423 = vmatmul.mubr.msk.bf16.gmra.mrb[28].mxu0 %vm891_vm5, %v880_v9 }
 0x1a9   : > { %v2294_v39 = vpop.f32.mrb[0].mxu1 }
 0x1aa   : > { %v1133_v37 = vpop.f32.mrb[1].mxu1 }
 0x1ab   : > { %v2295_v55 = vpop.f32.mrb[2].mxu1 }
 0x1ac   : > { %v1136_v22 = vpop.f32.mrb[3].mxu1 }
 0x1b1   : > { %v2298_v31 = vpop.f32.mrb[4].mxu1 }
 0x1b2   : > { %v1149_v50 = vpop.f32.mrb[5].mxu1 }
 0x1b3   : > { %v2299_v57 = vpop.f32.mrb[6].mxu1 }
 0x1b4   : > { %v1152_v16 = vpop.f32.mrb[7].mxu1 }
 0x1b9   : > { %v2302_v23 = vpop.f32.mrb[8].mxu1 }
 0x1ba   : > { %v1165_v44 = vpop.f32.mrb[9].mxu1 }
 0x1bb   : > { %v2303_v47 = vpop.f32.mrb[10].mxu1 }
 0x1bc   : > { %v1168_v25 = vpop.f32.mrb[11].mxu1 }
 0x1c1   : > { %v2306_v36 = vpop.f32.mrb[12].mxu1 }
 0x1c2   : > { %v1181_v48 = vpop.f32.mrb[13].mxu1 }
 0x1c3   : > { %v2307_v41 = vpop.f32.mrb[14].mxu1 }
 0x1c4   : > { %v1184_v42 = vpop.f32.mrb[15].mxu1 }
 0x1cb   : > { %v2396_v62 = vpop.f32.mrb[0].mxu0 }
 0x1cc   : > { %v2428_v12 = vadd.f32 %v2396_v62, %v2294_v39  ;;  %v1717_v46 = vpop.f32.mrb[1].mxu0 }
 0x1cd   : > { %v2429_v8 = vadd.f32 %v1717_v46, %v1133_v37  ;;  %v2397_v14 = vpop.f32.mrb[2].mxu0 }
 0x1ce   : > { %v1885_v43 = vadd.f32 %v2428_v12, %v3256_v4  ;;  %v2430_v51 = vadd.f32 %v2397_v14, %v2295_v55  ;;  %v1720_v1 = vpop.f32.mrb[3].mxu0 }
 0x1cf   : > { %v1883_v52 = vadd.f32 %v2429_v8, %v3256_v4  ;;  %v2431_v53 = vadd.f32 %v1720_v1, %v1136_v22 }
 0x1d0   : > { %1917 = vst.msk [vmem:[%s3261_s10 + $0x10] sm:$0xff] %vm799_vm3, %v1885_v43  ;;  %v1886_v54 = vadd.f32 %v2430_v51, %v3256_v4 }
 0x1d1   : > { %1915 = vst.msk [vmem:[%s3261_s10] sm:$0xff] %vm799_vm3, %v1883_v52  ;;  %v1884_v21 = vadd.f32 %v2431_v53, %v3256_v4 }
 0x1d2   : > { %1918 = vst.msk [vmem:[%s3261_s10 + $0x18] sm:$0xff] %vm799_vm3, %v1886_v54 }
 0x1d3   : > { %1916 = vst.msk [vmem:[%s3261_s10 + $0x8] sm:$0xff] %vm799_vm3, %v1884_v21  ;;  %v2400_v20 = vpop.f32.mrb[4].mxu0 }
 0x1d4   : > { %v2432_v60 = vadd.f32 %v2400_v20, %v2298_v31  ;;  %v1733_v35 = vpop.f32.mrb[5].mxu0 }
 0x1d5   : > { %v2433_v59 = vadd.f32 %v1733_v35, %v1149_v50  ;;  %v2401_v63 = vpop.f32.mrb[6].mxu0 }
 0x1d6   : > { %v1889_v49 = vadd.f32 %v2432_v60, %v3256_v4  ;;  %v2434_v6 = vadd.f32 %v2401_v63, %v2299_v57  ;;  %v1736_v11 = vpop.f32.mrb[7].mxu0 }
 0x1d7   : > { %v1887_v40 = vadd.f32 %v2433_v59, %v3256_v4  ;;  %v2435_v56 = vadd.f32 %v1736_v11, %v1152_v16 }
 0x1d8   : > { %1921 = vst.msk [vmem:[%s3261_s10 + $0x30] sm:$0xff] %vm799_vm3, %v1889_v49  ;;  %v1890_v15 = vadd.f32 %v2434_v6, %v3256_v4 }
 0x1d9   : > { %1919 = vst.msk [vmem:[%s3261_s10 + $0x20] sm:$0xff] %vm799_vm3, %v1887_v40  ;;  %v1888_v58 = vadd.f32 %v2435_v56, %v3256_v4 }
 0x1da   : > { %1922 = vst.msk [vmem:[%s3261_s10 + $0x38] sm:$0xff] %vm799_vm3, %v1890_v15 }
 0x1db   : > { %1920 = vst.msk [vmem:[%s3261_s10 + $0x28] sm:$0xff] %vm799_vm3, %v1888_v58  ;;  %v2404_v19 = vpop.f32.mrb[8].mxu0 }
 0x1dc   : > { %v2436_v24 = vadd.f32 %v2404_v19, %v2302_v23  ;;  %v1749_v61 = vpop.f32.mrb[9].mxu0 }
 0x1dd   : > { %v2437_v27 = vadd.f32 %v1749_v61, %v1165_v44  ;;  %v2405_v10 = vpop.f32.mrb[10].mxu0 }
 0x1de   : > { %v1893_v28 = vadd.f32 %v2436_v24, %v3256_v4  ;;  %v2438_v30 = vadd.f32 %v2405_v10, %v2303_v47  ;;  %v1752_v33 = vpop.f32.mrb[11].mxu0 }
 0x1df   : > { %v1891_v2 = vadd.f32 %v2437_v27, %v3256_v4  ;;  %v2439_v13 = vadd.f32 %v1752_v33, %v1168_v25 }
 0x1e0   : > { %1925 = vst.msk [vmem:[%s3261_s10 + $0x50] sm:$0xff] %vm799_vm3, %v1893_v28  ;;  %v1894_v32 = vadd.f32 %v2438_v30, %v3256_v4 }
 0x1e1   : > { %1923 = vst.msk [vmem:[%s3261_s10 + $0x40] sm:$0xff] %vm799_vm3, %v1891_v2  ;;  %v1892_v45 = vadd.f32 %v2439_v13, %v3256_v4 }
 0x1e2   : > { %1926 = vst.msk [vmem:[%s3261_s10 + $0x58] sm:$0xff] %vm799_vm3, %v1894_v32 }
 0x1e3   : > { %1924 = vst.msk [vmem:[%s3261_s10 + $0x48] sm:$0xff] %vm799_vm3, %v1892_v45  ;;  %v2408_v3 = vpop.f32.mrb[12].mxu0 }
 0x1e4   : > { %v2440_v26 = vadd.f32 %v2408_v3, %v2306_v36  ;;  %v1765_v7 = vpop.f32.mrb[13].mxu0 }
 0x1e5   : > { %v2441_v0 = vadd.f32 %v1765_v7, %v1181_v48  ;;  %v2409_v34 = vpop.f32.mrb[14].mxu0 }
 0x1e6   : > { %v1897_v29 = vadd.f32 %v2440_v26, %v3256_v4  ;;  %v2442_v17 = vadd.f32 %v2409_v34, %v2307_v41  ;;  %v1768_v18 = vpop.f32.mrb[15].mxu0 }
 0x1e7   : > { %v1895_v38 = vadd.f32 %v2441_v0, %v3256_v4  ;;  %v2443_v5 = vadd.f32 %v1768_v18, %v1184_v42 }
 0x1e8   : > { %1929 = vst.msk [vmem:[%s3261_s10 + $0x70] sm:$0xff] %vm799_vm3, %v1897_v29  ;;  %v1898_v9 = vadd.f32 %v2442_v17, %v3256_v4 }
 0x1e9   : > { %1927 = vst.msk [vmem:[%s3261_s10 + $0x60] sm:$0xff] %vm799_vm3, %v1895_v38  ;;  %v1896_v39 = vadd.f32 %v2443_v5, %v3256_v4  ;;  %v2344_v37 = vpop.f32.mrb[16].mxu1 }
 0x1ea   : > { %1930 = vst.msk [vmem:[%s3261_s10 + $0x78] sm:$0xff] %vm799_vm3, %v1898_v9  ;;  %v1370_v55 = vpop.f32.mrb[17].mxu1 }
 0x1eb   : > { %1928 = vst.msk [vmem:[%s3261_s10 + $0x68] sm:$0xff] %vm799_vm3, %v1896_v39  ;;  %v2412_v22 = vpop.f32.mrb[16].mxu0  ;;  %v2345_v31 = vpop.f32.mrb[18].mxu1 }
 0x1ec   : > { %v2444_v50 = vadd.f32 %v2412_v22, %v2344_v37  ;;  %v1781_v57 = vpop.f32.mrb[17].mxu0  ;;  %v1373_v16 = vpop.f32.mrb[19].mxu1 }
 0x1ed   : > { %v2445_v23 = vadd.f32 %v1781_v57, %v1370_v55  ;;  %v2413_v44 = vpop.f32.mrb[18].mxu0 }
 0x1ee   : > { %v1901_v47 = vadd.f32 %v2444_v50, %v3256_v4  ;;  %v2446_v25 = vadd.f32 %v2413_v44, %v2345_v31  ;;  %v1784_v36 = vpop.f32.mrb[19].mxu0 }
 0x1ef   : > { %v1899_v48 = vadd.f32 %v2445_v23, %v3256_v4  ;;  %v2447_v41 = vadd.f32 %v1784_v36, %v1373_v16 }
 0x1f0   : > { %1933 = vst.msk [vmem:[%s3261_s10 + $0x90] sm:$0xff] %vm799_vm3, %v1901_v47  ;;  %v1902_v42 = vadd.f32 %v2446_v25, %v3256_v4 }
 0x1f1   : > { %1931 = vst.msk [vmem:[%s3261_s10 + $0x80] sm:$0xff] %vm799_vm3, %v1899_v48  ;;  %v1900_v62 = vadd.f32 %v2447_v41, %v3256_v4  ;;  %v2348_v12 = vpop.f32.mrb[20].mxu1 }
 0x1f2   : > { %1934 = vst.msk [vmem:[%s3261_s10 + $0x98] sm:$0xff] %vm799_vm3, %v1902_v42  ;;  %v1386_v46 = vpop.f32.mrb[21].mxu1 }
 0x1f3   : > { %1932 = vst.msk [vmem:[%s3261_s10 + $0x88] sm:$0xff] %vm799_vm3, %v1900_v62  ;;  %v2416_v8 = vpop.f32.mrb[20].mxu0  ;;  %v2349_v14 = vpop.f32.mrb[22].mxu1 }
 0x1f4   : > { %v2448_v43 = vadd.f32 %v2416_v8, %v2348_v12  ;;  %v1797_v51 = vpop.f32.mrb[21].mxu0  ;;  %v1389_v1 = vpop.f32.mrb[23].mxu1 }
 0x1f5   : > { %v2449_v52 = vadd.f32 %v1797_v51, %v1386_v46  ;;  %v2417_v53 = vpop.f32.mrb[22].mxu0 }
 0x1f6   : > { %v1905_v54 = vadd.f32 %v2448_v43, %v3256_v4  ;;  %v2450_v21 = vadd.f32 %v2417_v53, %v2349_v14  ;;  %v1800_v20 = vpop.f32.mrb[23].mxu0 }
 0x1f7   : > { %v1903_v60 = vadd.f32 %v2449_v52, %v3256_v4  ;;  %v2451_v35 = vadd.f32 %v1800_v20, %v1389_v1 }
 0x1f8   : > { %1937 = vst.msk [vmem:[%s3261_s10 + $0xb0] sm:$0xff] %vm799_vm3, %v1905_v54  ;;  %v1906_v59 = vadd.f32 %v2450_v21, %v3256_v4 }
 0x1f9   : > { %1935 = vst.msk [vmem:[%s3261_s10 + $0xa0] sm:$0xff] %vm799_vm3, %v1903_v60  ;;  %v1904_v63 = vadd.f32 %v2451_v35, %v3256_v4  ;;  %v2352_v49 = vpop.f32.mrb[24].mxu1 }
 0x1fa   : > { %1938 = vst.msk [vmem:[%s3261_s10 + $0xb8] sm:$0xff] %vm799_vm3, %v1906_v59  ;;  %v1402_v6 = vpop.f32.mrb[25].mxu1 }
 0x1fb   : > { %1936 = vst.msk [vmem:[%s3261_s10 + $0xa8] sm:$0xff] %vm799_vm3, %v1904_v63  ;;  %v2420_v11 = vpop.f32.mrb[24].mxu0  ;;  %v2353_v40 = vpop.f32.mrb[26].mxu1 }
 0x1fc   : > { %v2452_v56 = vadd.f32 %v2420_v11, %v2352_v49  ;;  %v1813_v15 = vpop.f32.mrb[25].mxu0  ;;  %v1405_v58 = vpop.f32.mrb[27].mxu1 }
 0x1fd   : > { %v2453_v19 = vadd.f32 %v1813_v15, %v1402_v6  ;;  %v2421_v24 = vpop.f32.mrb[26].mxu0 }
 0x1fe   : > { %v1909_v61 = vadd.f32 %v2452_v56, %v3256_v4  ;;  %v2454_v27 = vadd.f32 %v2421_v24, %v2353_v40  ;;  %v1816_v10 = vpop.f32.mrb[27].mxu0 }
 0x1ff   : > { %v1907_v28 = vadd.f32 %v2453_v19, %v3256_v4  ;;  %v2455_v30 = vadd.f32 %v1816_v10, %v1405_v58 }
 0x200   : > { %1941 = vst.msk [vmem:[%s3261_s10 + $0xd0] sm:$0xff] %vm799_vm3, %v1909_v61  ;;  %v1910_v33 = vadd.f32 %v2454_v27, %v3256_v4 }
 0x201   : > { %1939 = vst.msk [vmem:[%s3261_s10 + $0xc0] sm:$0xff] %vm799_vm3, %v1907_v28  ;;  %v1908_v2 = vadd.f32 %v2455_v30, %v3256_v4  ;;  %v2356_v13 = vpop.f32.mrb[28].mxu1 }
 0x202   : > { %1942 = vst.msk [vmem:[%s3261_s10 + $0xd8] sm:$0xff] %vm799_vm3, %v1910_v33  ;;  %v1418_v32 = vpop.f32.mrb[29].mxu1 }
 0x203   : > { %1940 = vst.msk [vmem:[%s3261_s10 + $0xc8] sm:$0xff] %vm799_vm3, %v1908_v2  ;;  %v2424_v45 = vpop.f32.mrb[28].mxu0  ;;  %v2357_v3 = vpop.f32.mrb[30].mxu1 }
 0x204   : > { %v2456_v26 = vadd.f32 %v2424_v45, %v2356_v13  ;;  %v1829_v7 = vpop.f32.mrb[29].mxu0  ;;  %v1421_v0 = vpop.f32.mrb[31].mxu1 }
 0x205   : > { %v2457_v34 = vadd.f32 %v1829_v7, %v1418_v32  ;;  %v2425_v29 = vpop.f32.mrb[30].mxu0 }
 0x206   : > { %v1913_v17 = vadd.f32 %v2456_v26, %v3256_v4  ;;  %v2458_v18 = vadd.f32 %v2425_v29, %v2357_v3  ;;  %v1832_v38 = vpop.f32.mrb[31].mxu0 }
 0x207   : > { %v1911_v5 = vadd.f32 %v2457_v34, %v3256_v4  ;;  %v2459_v9 = vadd.f32 %v1832_v38, %v1421_v0 }
 0x208   : > { %1945 = vst.msk [vmem:[%s3261_s10 + $0xf0] sm:$0xff] %vm799_vm3, %v1913_v17  ;;  %v1914_v39 = vadd.f32 %v2458_v18, %v3256_v4 }
 0x209   : > { %1943 = vst.msk [vmem:[%s3261_s10 + $0xe0] sm:$0xff] %vm799_vm3, %v1911_v5  ;;  %v1912_v37 = vadd.f32 %v2459_v9, %v3256_v4 }
 0x20a   : > { %1946 = vst.msk [vmem:[%s3261_s10 + $0xf8] sm:$0xff] %vm799_vm3, %v1914_v39 }
 0x20b   : > { %1944 = vst.msk [vmem:[%s3261_s10 + $0xe8] sm:$0xff] %vm799_vm3, %v1912_v37 }
 0x20c PF: > { %s13_s14 = sadd.s32 1, %s2656_s14   ;;  %s3372_s12 = smov %s2652_s13 }
 0x20d   : > { %p10_p5 = scmp.ge.s32.totalorder %s13_s14, 4   ;;  %s3373_s13 = smov %s3375_s15 }
 0x20f   :  { %12 = sbr.rel (!%p10_p5) target bundleno = 2 (0x2), region = 62 }

</bundles_post_ra>
